<compile_context>
chip_gen: v5e
topology: v5e:2x2
jax: 0.10.0
libtpu: 0.0.40
codegen_flags: <defaults>
</compile_context>

<pallas_src>
import functools
import math

import jax
import jax.numpy as jnp
from jax.experimental import pallas as pl
from jax.experimental.pallas import tpu as pltpu


def _round_up(x, m):
    return (x + m - 1) // m * m


# ---------------------------------------------------------------------------
# Pallas kernel: one deep-K matmul + bias per tile of TM final output pixels
# ---------------------------------------------------------------------------
def _embedding422_kernel(x_ref, w_ref, b_ref, o_ref):
    """x_ref: (TM, 256*Cin)  w_ref: (256*Cin, Coutp)  b_ref: (1, Coutp) f32
    o_ref: (TM, Coutp)."""
    acc = jnp.dot(x_ref[...], w_ref[...], preferred_element_type=jnp.float32)
    o_ref[...] = (acc + b_ref[...]).astype(o_ref.dtype)


# ---------------------------------------------------------------------------
# Parameters: PyTorch-layout init + ONE-TIME fold of the three convs into a
# single (256*Cin, Cout) affine map (done at pack time, never per forward).
# ---------------------------------------------------------------------------
def init_embedding422_params(key, in_channels, out_channels):
    """Deterministic PyTorch-like init. Returns torch-layout (OIHW) params."""
    cfg = [
        (in_channels, out_channels // 4, 4),
        (out_channels // 4, out_channels // 2, 2),
        (out_channels // 2, out_channels, 2),
    ]
    params = []
    for cin, cout, k in cfg:
        key, wk, bk = jax.random.split(key, 3)
        bound = 1.0 / math.sqrt(cin * k * k)
        w = jax.random.uniform(wk, (cout, cin, k, k), jnp.float32, -bound, bound)
        b = jax.random.uniform(bk, (cout,), jnp.float32, -bound, bound)
        params.append({"w": w, "b": b})
    return params


def _conv_stack(x, params, with_bias=True):
    y = x
    for p in params:
        y = jax.lax.conv_general_dilated(
            y, p["w"], window_strides=p["w"].shape[2:], padding="VALID",
            dimension_numbers=("NCHW", "OIHW", "NCHW"),
            precision=jax.lax.Precision.HIGHEST)
        if with_bias:
            y = y + p["b"][None, :, None, None]
    return y


def pack_embedding422_params(params, compute_dtype=jnp.bfloat16):
    """Fold the 3 convs into W_total (256*Cin, Coutp) + bias (1, Cout).

    The fold is numeric and exact-by-construction: since the stack is affine on
    one 16x16 super-patch, feeding the identity basis recovers W_total and the
    zero input recovers the composed bias.  Cout is zero-padded to a multiple
    of 128 so the kernel output store is unmasked lane-dense; the true Cout is
    carried by the (unpadded) bias shape.  Column order of a patch row is
    (cin, dy, dx) — dx (contiguous in NCHW) innermost.
    """
    cin = params[0]["w"].shape[1]
    cout = params[2]["w"].shape[0]
    k_total = 256 * cin                       # 16*16 super-patch * Cin
    coutp = _round_up(cout, 128)

    basis = jnp.eye(k_total, dtype=jnp.float32).reshape(k_total, cin, 16, 16)
    w_total = _conv_stack(basis, params, with_bias=False)[:, :, 0, 0]   # (K, Cout)
    b_total = _conv_stack(jnp.zeros((1, cin, 16, 16), jnp.float32),
                          params, with_bias=True)[0, :, 0, 0]           # (Cout,)

    w_pad = jnp.zeros((k_total, coutp), jnp.float32).at[:, :cout].set(w_total)
    return {
        "w": w_pad.astype(compute_dtype),                # (K, Coutp) compute dtype
        "b": b_total.reshape(1, cout).astype(jnp.float32),  # (1, Cout) f32 (unpadded)
    }


# ---------------------------------------------------------------------------
# Tile selection: multiple of 8 (MXU/sublane friendly), >= 2 grid steps so
# dimension_semantics=("parallel",) can shard across both v7x TensorCores.
# ---------------------------------------------------------------------------
def _choose_tm(m, tile_m):
    if m <= 8:
        return m                                   # full-dim block is always legal
    tm = min(tile_m, m)
    if tm >= m:
        tm = (m + 1) // 2                          # force >= 2 grid steps
    return max(8, min(_round_up(tm, 8), m))


# ---------------------------------------------------------------------------
# Forward pass (NCHW in, NCHW out) — single pallas_call, single matmul
# ---------------------------------------------------------------------------
@functools.partial(jax.jit, static_argnames=("tile_m", "out_dtype"))
def embedding422_forward(x_nchw, packed, tile_m=512, out_dtype=None):
    wm, bias = packed["w"], packed["b"]
    n, cin, h, w = x_nchw.shape
    ho, wo = h // 16, w // 16
    if ho == 0 or wo == 0:
        raise ValueError("spatial dims must be >= 16")
    # PyTorch's chained floor-division of the three convs == crop to 16*floor.
    if (h, w) != (16 * ho, 16 * wo):
        x_nchw = x_nchw[:, :, :16 * ho, :16 * wo]

    k_total = wm.shape[0]
    assert k_total == 256 * cin, (k_total, cin)
    coutp = wm.shape[1]
    cout = bias.shape[1]
    m = n * ho * wo
    cdt = wm.dtype
    odt = x_nchw.dtype if out_dtype is None else out_dtype

    # Single fused rearrange (+ dtype cast): NCHW -> (M, 256*Cin), column order
    # (cin, dy, dx) with the contiguous 16-wide dx runs innermost.
    xr = x_nchw.reshape(n, cin, ho, 16, wo, 16)      # (N, C, Ho, dy, Wo, dx)
    xr = xr.transpose(0, 2, 4, 1, 3, 5)              # (N, Ho, Wo, C, dy, dx)
    patches = xr.reshape(m, k_total).astype(cdt)

    bias_p = bias if coutp == cout else jnp.pad(bias, ((0, 0), (0, coutp - cout)))

    tm = _choose_tm(m, tile_m)
    grid = (pl.cdiv(m, tm),)

    out = pl.pallas_call(
        _embedding422_kernel,
        out_shape=jax.ShapeDtypeStruct((m, coutp), odt),
        grid=grid,
        in_specs=[
            pl.BlockSpec((tm, k_total), lambda i: (i, 0)),      # patches (tiled over M)
            # Constant index maps -> W_total / bias stay VMEM-resident across
            # the grid.  (They are small after the fold; if Cout gets very
            # large, pipeline_mode=pl.Buffered(1) reclaims the second buffer.)
            pl.BlockSpec((k_total, coutp), lambda i: (0, 0)),   # W_total
            pl.BlockSpec((1, coutp), lambda i: (0, 0)),         # bias (f32)
        ],
        out_specs=pl.BlockSpec((tm, coutp), lambda i: (i, 0)),
        compiler_params=pltpu.CompilerParams(
            dimension_semantics=("parallel",),       # shard M over both v7x TCs
            vmem_limit_bytes=48 * 1024 * 1024,       # ample headroom, fits v7x
        ),
    )(patches, wm, bias_p)

    if coutp != cout:
        out = out[:, :cout]
    return out.reshape(n, ho, wo, cout).transpose(0, 3, 1, 2)    # -> NCHW


# ---------------------------------------------------------------------------
# Reference (pure JAX/XLA convs) for correctness checks
# ---------------------------------------------------------------------------
def embedding422_reference(x_nchw, params):
    return _conv_stack(x_nchw, params, with_bias=True)


if __name__ == "__main__":
    key = jax.random.PRNGKey(0)
    key, xkey = jax.random.split(key)

    in_channels, out_channels = 4, 32
    # total downsampling 4*2*2 = 16 -> output spatial 64/16 = 4, M = 2*4*4 = 32
    x = jax.random.normal(xkey, (2, in_channels, 64, 64), jnp.float32)

    params = init_embedding422_params(key, in_channels, out_channels)
    ref = embedding422_reference(x, params)

    # f32 compute path with a small tile (grid = 4, exercises M-tiling): strict.
    packed_f32 = pack_embedding422_params(params, compute_dtype=jnp.float32)
    out_f32 = jax.block_until_ready(embedding422_forward(x, packed_f32, tile_m=8))
    assert out_f32.shape == (2, out_channels, 4, 4), out_f32.shape
    assert jnp.allclose(out_f32, ref, atol=1e-3, rtol=1e-3), (
        float(jnp.max(jnp.abs(out_f32 - ref))))

    # bf16 compute path (production default): single rounding + f32 accumulate.
    packed_bf16 = pack_embedding422_params(params, compute_dtype=jnp.bfloat16)
    out_bf16 = jax.block_until_ready(embedding422_forward(x, packed_bf16))
    assert out_bf16.shape == (2, out_channels, 4, 4), out_bf16.shape
    assert jnp.allclose(out_bf16, ref, atol=5e-2, rtol=5e-2), (
        float(jnp.max(jnp.abs(out_bf16 - ref))))

    print("KERNEL_OK")
</pallas_src>

<mosaic_0001>
module attributes {stable_mosaic.version = 11 : i64} {
  func.func @_embedding422_kernel(%arg0: i32, %arg1: memref<8x1024xf32, #tpu.memory_space<vmem>>, %arg2: memref<1024x128xf32, #tpu.memory_space<vmem>>, %arg3: memref<1x128xf32, #tpu.memory_space<vmem>>, %arg4: memref<8x128xf32, #tpu.memory_space<vmem>>) attributes {dimension_semantics = [#tpu.dimension_semantics<parallel>], iteration_bounds = array<i64: 4>, scalar_prefetch = 0 : i64, scratch_operands = 0 : i64, tpu.core_type = #tpu.core_type<tc>, window_params = [{transform_indices = @transform_0, window_bounds = array<i64: 8, 1024>}, {pipeline_mode = #tpu.pipeline_mode<synchronous>, transform_indices = @transform_1, window_bounds = array<i64: 1024, 128>}, {pipeline_mode = #tpu.pipeline_mode<synchronous>, transform_indices = @transform_2, window_bounds = array<i64: 1, 128>}, {transform_indices = @transform_3, window_bounds = array<i64: 8, 128>}]} {
    %c0 = arith.constant 0 : index
    %c0_0 = arith.constant 0 : index
    %0 = vector.load %arg1[%c0, %c0_0] : memref<8x1024xf32, #tpu.memory_space<vmem>>, vector<8x1024xf32>
    %c0_1 = arith.constant 0 : index
    %c0_2 = arith.constant 0 : index
    %1 = vector.load %arg2[%c0_1, %c0_2] : memref<1024x128xf32, #tpu.memory_space<vmem>>, vector<1024x128xf32>
    %cst = arith.constant dense<0.000000e+00> : vector<8x128xf32>
    %2 = tpu.matmul %0, %1, %cst {dimension_numbers = #tpu.dot_dimension_numbers<[1], [0], [0], [1], [0, 0, 1, 1], [], []>} : vector<8x1024xf32>, vector<1024x128xf32>, vector<8x128xf32> -> vector<8x128xf32>
    %c0_3 = arith.constant 0 : index
    %c0_4 = arith.constant 0 : index
    %3 = vector.load %arg3[%c0_3, %c0_4] : memref<1x128xf32, #tpu.memory_space<vmem>>, vector<1x128xf32>
    %4 = vector.broadcast %3 : vector<1x128xf32> to vector<8x128xf32>
    %5 = arith.addf %2, %4 : vector<8x128xf32>
    %c0_5 = arith.constant 0 : index
    %c0_6 = arith.constant 0 : index
    %6 = vector.load %arg4[%c0_5, %c0_6] : memref<8x128xf32, #tpu.memory_space<vmem>>, vector<8x128xf32>
    tpu.vector_store %arg4[%c0_5, %c0_6], %5 {strides = array<i32>} : memref<8x128xf32, #tpu.memory_space<vmem>>, vector<8x128xf32>,
    return
  }
  func.func @transform_0(%arg0: i32) -> (i32, i32) {
    %c0_i32 = arith.constant 0 : i32
    %c0_i32_0 = arith.constant 0 : i32
    return %arg0, %c0_i32 : i32, i32
  }
  func.func @transform_1(%arg0: i32) -> (i32, i32) {
    %c0_i32 = arith.constant 0 : i32
    %c0_i32_0 = arith.constant 0 : i32
    %c0_i32_1 = arith.constant 0 : i32
    return %c0_i32, %c0_i32_0 : i32, i32
  }
  func.func @transform_2(%arg0: i32) -> (i32, i32) {
    %c0_i32 = arith.constant 0 : i32
    %c0_i32_0 = arith.constant 0 : i32
    %c0_i32_1 = arith.constant 0 : i32
    return %c0_i32, %c0_i32_0 : i32, i32
  }
  func.func @transform_3(%arg0: i32) -> (i32, i32) {
    %c0_i32 = arith.constant 0 : i32
    %c0_i32_0 = arith.constant 0 : i32
    return %arg0, %c0_i32 : i32, i32
  }
}

</mosaic_0001>

<bundles_post_ra>
// kernel: embedding422_forward.1
= control target key start
LH: loop header
LB: loop body
LE: loop exit
PB: predicated region body
PF: predicated region fallthrough
CT: control target
= control target key end

     0   :  { %8 = vsyncpa [#allocation3], 0  ;;  %s1168_s0 = inlined_call_operand.vmem [shape: f32[32,1024], index: 0, kind: input, shape index: {}]   ;;  %s1169_s1 = inlined_call_operand.vmem [shape: f32[1024,128], index: 1, kind: input, shape index: {}]   ;;  %s1170_s2 = inlined_call_operand.vmem [shape: f32[1,128], index: 2, kind: input, shape index: {}]   ;;  %s1171_s3 = inlined_call_operand.hbm [shape: f32[32,128], index: 3, kind: output, shape index: {}]  }
   0x1   :  { %10 = vsyncpa [#allocation3 + $0x1], 0  ;;  %s681_s12 = smov 0   ;;  %s683_s13 = smov 0  }
   0x2   :  { %s685_s14 = smov 0   ;;  %s687_s15 = smov 0  }
   0x3 LB: > { %s702_s16 = sadd.s32 4294967295, %s659_s15   ;;  %s545_s17 = sadd.s32 4294967294, %s659_s15   ;;  %s659_s15 = sphi %s687_s15, %s1177_s15   ;;  %s655_s14 = sphi %s685_s14, %s1176_s14   ;;  %s651_s13 = sphi %s683_s13, %s1175_s13   ;;  %s647_s12 = sphi %s681_s12, %s1174_s12  }
   0x4   : > { %s706_s18 = sadd.s32 1, %s659_s15   ;;  %s91_s19 = sadd.s32 1, %s655_s14 }
   0x5   : > { %s88_s20 = ssub.s32 %s659_s15, %s706_s18  ;;  %p101_p0 = scmp.ne.s32.totalorder %s655_s14, %s651_s13 }
   0x6   : > { %p89_p1 = scmp.eq.s32.totalorder %s88_s20, 0  ;;  %p102_p2 = scmp.eq.s32.totalorder %s702_s16, 3 }
   0x7   : > { %p107_p3 = scmp.ne.s32.totalorder %s651_s13, %s647_s12  ;;  %p108_p4 = scmp.eq.s32.totalorder %s545_s17, 3 }
   0x8   : > { %s717_s21 = scalar_select %p89_p1, %s655_s14, %s91_s19  }
   0x9   : > { %p719_p5 = por %p102_p2, %p101_p0  ;;  %p723_p6 = por %p108_p4, %p107_p3 }
   0xa   : > { %p548_p7 = scmp.ge.s32.totalorder %s659_s15, 1  ;;  %p140_p8 = scmp.lt.s32.totalorder %s659_s15, 5 }
   0xc   : > { %p141_p9 = pnand %p548_p7, %p140_p8 }
   0xd   : > { %p164_p10 = scmp.lt.s32.totalorder (!%p141_p9), %s702_s16, 3  ;;  %s161_s10 = sand.u32 (!%p141_p9), 1, %s651_s13  }
   0xe   : > { %144 = sbr.rel (%p141_p9) target bundleno = 224 (0xe0), region = 32  ;;  %s549_s17 = sshll.u32 (!%p141_p9), %s161_s10, 3 }
   0xf   : > { %s163_s27 = scalar_lea.vmem (!%p141_p9), [#allocation2], %s549_s17 }
  0x10   : > { %s483_s28 = sshll.u32 (!%p141_p9), %s163_s27, 4  ;;  %s484_s28 = int_to_ptr.vmem [resolvable:$true] %s483_s28 }
  0x13   : > { %v224_v0 = vld [vmem:[%s1169_s1 + $0x178] sm:$0xff]  ;;  %v223_v2 = vld [vmem:[%s1169_s1 + $0x170] sm:$0xff]  ;;  %v222_v6 = vld [vmem:[%s1169_s1 + $0x168] sm:$0xff]  ;;  %s1003_s24 = scalar_select %p164_p10, %s702_s16, 3 }
  0x14   : > { %v192_v1 = vld [vmem:[%s1169_s1 + $0x78] sm:$0xff]  ;;  %349 = vmatpush.msra.mxu2 %v224_v0  ;;  %v191_v4 = vld [vmem:[%s1169_s1 + $0x70] sm:$0xff]  ;;  %v190_v8 = vld [vmem:[%s1169_s1 + $0x68] sm:$0xff] }
  0x15   : > { %309 = vmatpush.msra.mxu0 %v192_v1  ;;  %v240_v3 = vld [vmem:[%s1169_s1 + $0x1f8] sm:$0xff]  ;;  %v239_v7 = vld [vmem:[%s1169_s1 + $0x1f0] sm:$0xff]  ;;  %v238_v10 = vld [vmem:[%s1169_s1 + $0x1e8] sm:$0xff]  ;;  %s556_s20 = sshll.u32 %s1003_s24, 6  ;;  %s617_s24 = scalar_lea.hbm %s1171_s3, 32 }
  0x16   : > { %v208_v5 = vld [vmem:[%s1169_s1 + $0xf8] sm:$0xff]  ;;  %369 = vmatpush.msra.mxu3 %v240_v3  ;;  %350 = vmatpush.msra.mxu2 %v223_v2  ;;  %v207_v9 = vld [vmem:[%s1169_s1 + $0xf0] sm:$0xff]  ;;  %v221_v11 = vld [vmem:[%s1169_s1 + $0x160] sm:$0xff]  ;;  %s1051_s11 = scalar_lea.vmem %s1168_s0, %s556_s20 }
  0x17   : > { %329 = vmatpush.msra.mxu1 %v208_v5  ;;  %310 = vmatpush.msra.mxu0 %v191_v4  ;;  %v189_v12 = vld [vmem:[%s1169_s1 + $0x60] sm:$0xff]  ;;  %v206_v13 = vld [vmem:[%s1169_s1 + $0xe8] sm:$0xff]  ;;  %v220_v16 = vld [vmem:[%s1169_s1 + $0x158] sm:$0xff] }
  0x18   : > { %370 = vmatpush.msra.mxu3 %v239_v7  ;;  %351 = vmatpush.msra.mxu2 %v222_v6  ;;  %v237_v14 = vld [vmem:[%s1169_s1 + $0x1e0] sm:$0xff]  ;;  %v188_v17 = vld [vmem:[%s1169_s1 + $0x58] sm:$0xff]  ;;  %v219_v20 = vld [vmem:[%s1169_s1 + $0x150] sm:$0xff] }
  0x19   : > { %330 = vmatpush.msra.mxu1 %v207_v9  ;;  %311 = vmatpush.msra.mxu0 %v190_v8  ;;  %v205_v15 = vld [vmem:[%s1169_s1 + $0xe0] sm:$0xff]  ;;  %v236_v18 = vld [vmem:[%s1169_s1 + $0x1d8] sm:$0xff]  ;;  %v187_v21 = vld [vmem:[%s1169_s1 + $0x50] sm:$0xff] }
  0x1a   : > { %371 = vmatpush.msra.mxu3 %v238_v10  ;;  %352 = vmatpush.msra.mxu2 %v221_v11  ;;  %v204_v19 = vld [vmem:[%s1169_s1 + $0xd8] sm:$0xff]  ;;  %v235_v22 = vld [vmem:[%s1169_s1 + $0x1d0] sm:$0xff]  ;;  %v218_v24 = vld [vmem:[%s1169_s1 + $0x148] sm:$0xff] }
  0x1b   : > { %331 = vmatpush.msra.mxu1 %v206_v13  ;;  %312 = vmatpush.msra.mxu0 %v189_v12  ;;  %v203_v23 = vld [vmem:[%s1169_s1 + $0xd0] sm:$0xff]  ;;  %v186_v25 = vld [vmem:[%s1169_s1 + $0x48] sm:$0xff]  ;;  %v217_v28 = vld [vmem:[%s1169_s1 + $0x140] sm:$0xff] }
  0x1c   : > { %372 = vmatpush.msra.mxu3 %v237_v14  ;;  %353 = vmatpush.msra.mxu2 %v220_v16  ;;  %v234_v26 = vld [vmem:[%s1169_s1 + $0x1c8] sm:$0xff]  ;;  %v185_v29 = vld [vmem:[%s1169_s1 + $0x40] sm:$0xff]  ;;  %v216_v32 = vld [vmem:[%s1169_s1 + $0x138] sm:$0xff] }
  0x1d   : > { %332 = vmatpush.msra.mxu1 %v205_v15  ;;  %313 = vmatpush.msra.mxu0 %v188_v17  ;;  %v202_v27 = vld [vmem:[%s1169_s1 + $0xc8] sm:$0xff]  ;;  %v233_v30 = vld [vmem:[%s1169_s1 + $0x1c0] sm:$0xff]  ;;  %v184_v33 = vld [vmem:[%s1169_s1 + $0x38] sm:$0xff] }
  0x1e   : > { %373 = vmatpush.msra.mxu3 %v236_v18  ;;  %354 = vmatpush.msra.mxu2 %v219_v20  ;;  %v201_v31 = vld [vmem:[%s1169_s1 + $0xc0] sm:$0xff]  ;;  %v232_v34 = vld [vmem:[%s1169_s1 + $0x1b8] sm:$0xff]  ;;  %v215_v36 = vld [vmem:[%s1169_s1 + $0x130] sm:$0xff] }
  0x1f   : > { %333 = vmatpush.msra.mxu1 %v204_v19  ;;  %314 = vmatpush.msra.mxu0 %v187_v21  ;;  %v200_v35 = vld [vmem:[%s1169_s1 + $0xb8] sm:$0xff]  ;;  %v183_v37 = vld [vmem:[%s1169_s1 + $0x30] sm:$0xff]  ;;  %v214_v40 = vld [vmem:[%s1169_s1 + $0x128] sm:$0xff] }
  0x20   : > { %374 = vmatpush.msra.mxu3 %v235_v22  ;;  %355 = vmatpush.msra.mxu2 %v218_v24  ;;  %v231_v38 = vld [vmem:[%s1169_s1 + $0x1b0] sm:$0xff]  ;;  %v182_v41 = vld [vmem:[%s1169_s1 + $0x28] sm:$0xff]  ;;  %v213_v44 = vld [vmem:[%s1169_s1 + $0x120] sm:$0xff] }
  0x21   : > { %334 = vmatpush.msra.mxu1 %v203_v23  ;;  %315 = vmatpush.msra.mxu0 %v186_v25  ;;  %v199_v39 = vld [vmem:[%s1169_s1 + $0xb0] sm:$0xff]  ;;  %v230_v42 = vld [vmem:[%s1169_s1 + $0x1a8] sm:$0xff]  ;;  %v181_v45 = vld [vmem:[%s1169_s1 + $0x20] sm:$0xff] }
  0x22   : > { %375 = vmatpush.msra.mxu3 %v234_v26  ;;  %356 = vmatpush.msra.mxu2 %v217_v28  ;;  %v198_v43 = vld [vmem:[%s1169_s1 + $0xa8] sm:$0xff]  ;;  %v229_v46 = vld [vmem:[%s1169_s1 + $0x1a0] sm:$0xff]  ;;  %v212_v48 = vld [vmem:[%s1169_s1 + $0x118] sm:$0xff] }
  0x23   : > { %335 = vmatpush.msra.mxu1 %v202_v27  ;;  %316 = vmatpush.msra.mxu0 %v185_v29  ;;  %v197_v47 = vld [vmem:[%s1169_s1 + $0xa0] sm:$0xff]  ;;  %v180_v49 = vld [vmem:[%s1169_s1 + $0x18] sm:$0xff]  ;;  %v211_v52 = vld [vmem:[%s1169_s1 + $0x110] sm:$0xff] }
  0x24   : > { %376 = vmatpush.msra.mxu3 %v233_v30  ;;  %357 = vmatpush.msra.mxu2 %v216_v32  ;;  %v228_v50 = vld [vmem:[%s1169_s1 + $0x198] sm:$0xff]  ;;  %v179_v53 = vld [vmem:[%s1169_s1 + $0x10] sm:$0xff]  ;;  %v210_v56 = vld [vmem:[%s1169_s1 + $0x108] sm:$0xff] }
  0x25   : > { %336 = vmatpush.msra.mxu1 %v201_v31  ;;  %317 = vmatpush.msra.mxu0 %v184_v33  ;;  %v196_v51 = vld [vmem:[%s1169_s1 + $0x98] sm:$0xff]  ;;  %v227_v54 = vld [vmem:[%s1169_s1 + $0x190] sm:$0xff]  ;;  %v178_v57 = vld [vmem:[%s1169_s1 + $0x8] sm:$0xff] }
  0x26   : > { %377 = vmatpush.msra.mxu3 %v232_v34  ;;  %358 = vmatpush.msra.mxu2 %v215_v36  ;;  %v195_v55 = vld [vmem:[%s1169_s1 + $0x90] sm:$0xff]  ;;  %v226_v58 = vld [vmem:[%s1169_s1 + $0x188] sm:$0xff]  ;;  %v209_v60 = vld [vmem:[%s1169_s1 + $0x100] sm:$0xff] }
  0x27   : > { %337 = vmatpush.msra.mxu1 %v200_v35  ;;  %318 = vmatpush.msra.mxu0 %v183_v37  ;;  %v194_v59 = vld [vmem:[%s1169_s1 + $0x88] sm:$0xff]  ;;  %v177_v61 = vld [vmem:[%s1169_s1] sm:$0xff]  ;;  %v288_v62 = vld [vmem:[%s1169_s1 + $0x378] sm:$0xff] }
  0x28   : > { %378 = vmatpush.msra.mxu3 %v231_v38  ;;  %359 = vmatpush.msra.mxu2 %v214_v40  ;;  %v225_v63 = vld [vmem:[%s1169_s1 + $0x180] sm:$0xff]  ;;  %v256_v0 = vld [vmem:[%s1169_s1 + $0x278] sm:$0xff]  ;;  %v287_v2 = vld [vmem:[%s1169_s1 + $0x370] sm:$0xff] }
  0x29   : > { %338 = vmatpush.msra.mxu1 %v199_v39  ;;  %319 = vmatpush.msra.mxu0 %v182_v41  ;;  %v304_v1 = vld [vmem:[%s1169_s1 + $0x3f8] sm:$0xff]  ;;  %v193_v3 = vld [vmem:[%s1169_s1 + $0x80] sm:$0xff]  ;;  %v255_v4 = vld [vmem:[%s1169_s1 + $0x270] sm:$0xff] }
  0x2a   : > { %379 = vmatpush.msra.mxu3 %v230_v42  ;;  %360 = vmatpush.msra.mxu2 %v213_v44  ;;  %v272_v5 = vld [vmem:[%s1169_s1 + $0x2f8] sm:$0xff]  ;;  %v286_v6 = vld [vmem:[%s1169_s1 + $0x368] sm:$0xff]  ;;  %v303_v7 = vld [vmem:[%s1169_s1 + $0x3f0] sm:$0xff] }
  0x2b   : > { %339 = vmatpush.msra.mxu1 %v198_v43  ;;  %320 = vmatpush.msra.mxu0 %v181_v45  ;;  %v254_v8 = vld [vmem:[%s1169_s1 + $0x268] sm:$0xff]  ;;  %v271_v9 = vld [vmem:[%s1169_s1 + $0x2f0] sm:$0xff]  ;;  %v285_v10 = vld [vmem:[%s1169_s1 + $0x360] sm:$0xff] }
  0x2c   : > { %380 = vmatpush.msra.mxu3 %v229_v46  ;;  %361 = vmatpush.msra.mxu2 %v212_v48  ;;  %v302_v11 = vld [vmem:[%s1169_s1 + $0x3e8] sm:$0xff]  ;;  %v253_v12 = vld [vmem:[%s1169_s1 + $0x260] sm:$0xff]  ;;  %v284_v14 = vld [vmem:[%s1169_s1 + $0x358] sm:$0xff] }
  0x2d   : > { %340 = vmatpush.msra.mxu1 %v197_v47  ;;  %321 = vmatpush.msra.mxu0 %v180_v49  ;;  %v270_v13 = vld [vmem:[%s1169_s1 + $0x2e8] sm:$0xff]  ;;  %v301_v15 = vld [vmem:[%s1169_s1 + $0x3e0] sm:$0xff]  ;;  %v252_v16 = vld [vmem:[%s1169_s1 + $0x258] sm:$0xff] }
  0x2e   : > { %381 = vmatpush.msra.mxu3 %v228_v50  ;;  %362 = vmatpush.msra.mxu2 %v211_v52  ;;  %v269_v17 = vld [vmem:[%s1169_s1 + $0x2e0] sm:$0xff]  ;;  %v283_v18 = vld [vmem:[%s1169_s1 + $0x350] sm:$0xff]  ;;  %v300_v19 = vld [vmem:[%s1169_s1 + $0x3d8] sm:$0xff] }
  0x2f   : > { %341 = vmatpush.msra.mxu1 %v196_v51  ;;  %322 = vmatpush.msra.mxu0 %v179_v53  ;;  %v251_v20 = vld [vmem:[%s1169_s1 + $0x250] sm:$0xff]  ;;  %v268_v21 = vld [vmem:[%s1169_s1 + $0x2d8] sm:$0xff]  ;;  %v282_v22 = vld [vmem:[%s1169_s1 + $0x348] sm:$0xff] }
  0x30   : > { %382 = vmatpush.msra.mxu3 %v227_v54  ;;  %363 = vmatpush.msra.mxu2 %v210_v56  ;;  %v299_v23 = vld [vmem:[%s1169_s1 + $0x3d0] sm:$0xff]  ;;  %v250_v24 = vld [vmem:[%s1169_s1 + $0x248] sm:$0xff]  ;;  %v281_v26 = vld [vmem:[%s1169_s1 + $0x340] sm:$0xff] }
  0x31   : > { %342 = vmatpush.msra.mxu1 %v195_v55  ;;  %323 = vmatpush.msra.mxu0 %v178_v57  ;;  %v267_v25 = vld [vmem:[%s1169_s1 + $0x2d0] sm:$0xff]  ;;  %v298_v27 = vld [vmem:[%s1169_s1 + $0x3c8] sm:$0xff]  ;;  %v249_v28 = vld [vmem:[%s1169_s1 + $0x240] sm:$0xff] }
  0x32   : > { %383 = vmatpush.msra.mxu3 %v226_v58  ;;  %364 = vmatpush.msra.mxu2 %v209_v60  ;;  %v266_v29 = vld [vmem:[%s1169_s1 + $0x2c8] sm:$0xff]  ;;  %v280_v30 = vld [vmem:[%s1169_s1 + $0x338] sm:$0xff]  ;;  %v297_v31 = vld [vmem:[%s1169_s1 + $0x3c0] sm:$0xff] }
  0x33   : > { %343 = vmatpush.msra.mxu1 %v194_v59  ;;  %324 = vmatpush.msra.mxu0 %v177_v61  ;;  %v248_v32 = vld [vmem:[%s1169_s1 + $0x238] sm:$0xff]  ;;  %v265_v33 = vld [vmem:[%s1169_s1 + $0x2c0] sm:$0xff]  ;;  %v279_v34 = vld [vmem:[%s1169_s1 + $0x330] sm:$0xff] }
  0x34   : > { %429 = vmatpush.msrb.mxu2 %v288_v62  ;;  %384 = vmatpush.msra.mxu3 %v225_v63  ;;  %v296_v35 = vld [vmem:[%s1169_s1 + $0x3b8] sm:$0xff]  ;;  %v247_v36 = vld [vmem:[%s1169_s1 + $0x230] sm:$0xff]  ;;  %v278_v38 = vld [vmem:[%s1169_s1 + $0x328] sm:$0xff] }
  0x35   : > { %389 = vmatpush.msrb.mxu0 %v256_v0  ;;  %344 = vmatpush.msra.mxu1 %v193_v3  ;;  %v264_v37 = vld [vmem:[%s1169_s1 + $0x2b8] sm:$0xff]  ;;  %v295_v39 = vld [vmem:[%s1169_s1 + $0x3b0] sm:$0xff]  ;;  %v246_v40 = vld [vmem:[%s1169_s1 + $0x228] sm:$0xff] }
  0x36   : > { %449 = vmatpush.msrb.mxu3 %v304_v1  ;;  %430 = vmatpush.msrb.mxu2 %v287_v2  ;;  %v263_v41 = vld [vmem:[%s1169_s1 + $0x2b0] sm:$0xff]  ;;  %v277_v42 = vld [vmem:[%s1169_s1 + $0x320] sm:$0xff]  ;;  %v294_v43 = vld [vmem:[%s1169_s1 + $0x3a8] sm:$0xff] }
  0x37   : > { %390 = vmatpush.msrb.mxu0 %v255_v4  ;;  %409 = vmatpush.msrb.mxu1 %v272_v5  ;;  %v171_v44 = vld [vmem:[%s1051_s11 + $0x10] sm:$0xff]  ;;  %v245_v45 = vld [vmem:[%s1169_s1 + $0x220] sm:$0xff]  ;;  %v262_v46 = vld [vmem:[%s1169_s1 + $0x2a8] sm:$0xff] }
  0x38   : > { %431 = vmatpush.msrb.mxu2 %v286_v6  ;;  %450 = vmatpush.msrb.mxu3 %v303_v7  ;;  %v276_v47 = vld [vmem:[%s1169_s1 + $0x318] sm:$0xff]  ;;  %v293_v48 = vld [vmem:[%s1169_s1 + $0x3a0] sm:$0xff]  ;;  %v275_v53 = vld [vmem:[%s1169_s1 + $0x310] sm:$0xff] }
  0x39   : > { %391 = vmatpush.msrb.mxu0 %v254_v8  ;;  %410 = vmatpush.msrb.mxu1 %v271_v9  ;;  %v169_v49 = vld [vmem:[%s1051_s11] sm:$0xff]  ;;  %v172_v50 = vld [vmem:[%s1051_s11 + $0x18] sm:$0xff]  ;;  %v170_v55 = vld [vmem:[%s1051_s11 + $0x8] sm:$0xff] }
  0x3a   : > { %432 = vmatpush.msrb.mxu2 %v285_v10  ;;  %451 = vmatpush.msrb.mxu3 %v302_v11  ;;  %v244_v51 = vld [vmem:[%s1169_s1 + $0x218] sm:$0xff]  ;;  %v261_v52 = vld [vmem:[%s1169_s1 + $0x2a0] sm:$0xff]  ;;  %v243_v56 = vld [vmem:[%s1169_s1 + $0x210] sm:$0xff] }
  0x3b   : > { %392 = vmatpush.msrb.mxu0 %v253_v12  ;;  %411 = vmatpush.msrb.mxu1 %v270_v13  ;;  %v292_v54 = vld [vmem:[%s1169_s1 + $0x398] sm:$0xff]  ;;  %v274_v58 = vld [vmem:[%s1169_s1 + $0x308] sm:$0xff]  ;;  %v291_v59 = vld [vmem:[%s1169_s1 + $0x390] sm:$0xff] }
  0x3c   : > { %433 = vmatpush.msrb.mxu2 %v284_v14  ;;  %452 = vmatpush.msrb.mxu3 %v301_v15  ;;  %v260_v57 = vld [vmem:[%s1169_s1 + $0x298] sm:$0xff]  ;;  %v242_v60 = vld [vmem:[%s1169_s1 + $0x208] sm:$0xff]  ;;  %v259_v61 = vld [vmem:[%s1169_s1 + $0x290] sm:$0xff] }
  0x3d   : > { %393 = vmatpush.msrb.mxu0 %v252_v16  ;;  %412 = vmatpush.msrb.mxu1 %v269_v17  ;;  %v273_v62 = vld [vmem:[%s1169_s1 + $0x300] sm:$0xff]  ;;  %v290_v63 = vld [vmem:[%s1169_s1 + $0x388] sm:$0xff]  ;;  %v175_v0 = vld [vmem:[%s1051_s11 + $0x30] sm:$0xff] }
  0x3e   : > { %434 = vmatpush.msrb.mxu2 %v283_v18  ;;  %453 = vmatpush.msrb.mxu3 %v300_v19  ;;  %v241_v1 = vld [vmem:[%s1169_s1 + $0x200] sm:$0xff]  ;;  %v258_v2 = vld [vmem:[%s1169_s1 + $0x288] sm:$0xff]  ;;  %v176_v5 = vld [vmem:[%s1051_s11 + $0x38] sm:$0xff] }
  0x3f   : > { %394 = vmatpush.msrb.mxu0 %v251_v20  ;;  %413 = vmatpush.msrb.mxu1 %v268_v21  ;;  %v289_v3 = vld [vmem:[%s1169_s1 + $0x380] sm:$0xff]  ;;  %v174_v7 = vld [vmem:[%s1051_s11 + $0x28] sm:$0xff] }
  0x40   : > { %435 = vmatpush.msrb.mxu2 %v282_v22  ;;  %454 = vmatpush.msrb.mxu3 %v299_v23  ;;  %v173_v4 = vld [vmem:[%s1051_s11 + $0x20] sm:$0xff]  ;;  %s553_s11 = sshll.u32 %s702_s16, 3  ;;  %s471_s16 = scalar_lea.sflag [#allocation3], %s161_s10 }
  0x41   : > { %395 = vmatpush.msrb.mxu0 %v250_v24  ;;  %414 = vmatpush.msrb.mxu1 %v267_v25  ;;  %v257_v6 = vld [vmem:[%s1169_s1 + $0x280] sm:$0xff]  ;;  %s481_s26 = scalar_lea.hbm %s1171_s3, %s553_s11 }
  0x42   : > { %436 = vmatpush.msrb.mxu2 %v281_v26  ;;  %455 = vmatpush.msrb.mxu3 %v298_v27  ;;  %v596_v8 = vld [vmem:[%s1170_s2] ss:$0 sm:$0xff]  ;;  %s485_s20 = sshll.u32 %s481_s26, 4  ;;  %s486_s20 = int_to_ptr.hbm [resolvable:$true] %s485_s20 }
  0x43   : > { %396 = vmatpush.msrb.mxu0 %v249_v28  ;;  %415 = vmatpush.msrb.mxu1 %v266_v29  ;;  %s611_s29 = sshra.s32 %s486_s20, 4  ;;  %s612_s29 = int_to_ptr.hbm [resolvable:$true] %s611_s29 }
  0x44   : > { %437 = vmatpush.msrb.mxu2 %v280_v30  ;;  %456 = vmatpush.msrb.mxu3 %v297_v31  ;;  %s613_s30 = scalar_lea.hbm %s612_s29, 8  ;;  %p618_p0 = scmp.lt.s32.totalorder %s612_s29, %s1171_s3 }
  0x45   : > { %397 = vmatpush.msrb.mxu0 %v248_v32  ;;  %416 = vmatpush.msrb.mxu1 %v265_v33  ;;  %p614_p11 = scmp.ne.s32.totalorder %s612_s29, %s613_s30  ;;  %p619_p1 = scmp.lt.s32.totalorder %s617_s24, %s613_s30 }
  0x46   : > { %438 = vmatpush.msrb.mxu2 %v279_v34  ;;  %457 = vmatpush.msrb.mxu3 %v296_v35 }
  0x47   : > { %398 = vmatpush.msrb.mxu0 %v247_v36  ;;  %417 = vmatpush.msrb.mxu1 %v264_v37  ;;  %p615_p12 = pnand %p614_p11, %p719_p5  ;;  %p620_p2 = por %p619_p1, %p618_p0 }
  0x48   : > { %439 = vmatpush.msrb.mxu2 %v278_v38  ;;  %458 = vmatpush.msrb.mxu3 %v295_v39 }
  0x49   : > { %399 = vmatpush.msrb.mxu0 %v246_v40  ;;  %418 = vmatpush.msrb.mxu1 %v263_v41  ;;  %p616_p13 = pneg %p615_p12 }
  0x4a   : > { %440 = vmatpush.msrb.mxu2 %v277_v42  ;;  %459 = vmatpush.msrb.mxu3 %v294_v43 }
  0x4b   : > { %365 = vmatmul.f32.vlgmr.msra.gmra.mxu2 %v171_v44  ;;  %400 = vmatpush.msrb.mxu0 %v245_v45  ;;  %p621_p3 = pnand %p620_p2, %p616_p13 }
  0x4c   : > { %419 = vmatpush.msrb.mxu1 %v262_v46  ;;  %441 = vmatpush.msrb.mxu2 %v276_v47 }
  0x4d   : > { %460 = vmatpush.msrb.mxu3 %v293_v48  ;;  %325 = vmatmul.f32.vlgmr.msra.gmra.mxu0 %v169_v49 }
  0x4e   : > { %385 = vmatmul.f32.vlgmr.msra.gmra.mxu3 %v172_v50  ;;  %401 = vmatpush.msrb.mxu0 %v244_v51 }
  0x4f   : > { %420 = vmatpush.msrb.mxu1 %v261_v52  ;;  %442 = vmatpush.msrb.mxu2 %v275_v53 }
  0x50   : > { %461 = vmatpush.msrb.mxu3 %v292_v54  ;;  %345 = vmatmul.f32.vlgmr.msra.gmra.mxu1 %v170_v55 }
  0x51   : > { %402 = vmatpush.msrb.mxu0 %v243_v56  ;;  %421 = vmatpush.msrb.mxu1 %v260_v57 }
  0x52   : > { %443 = vmatpush.msrb.mxu2 %v274_v58  ;;  %462 = vmatpush.msrb.mxu3 %v291_v59 }
  0x53   : > { %403 = vmatpush.msrb.mxu0 %v242_v60  ;;  %422 = vmatpush.msrb.mxu1 %v259_v61 }
  0x54   : > { %444 = vmatpush.msrb.mxu2 %v273_v62  ;;  %463 = vmatpush.msrb.mxu3 %v290_v63 }
  0x55   : > { %445 = vmatmul.f32.vlgmr.msrb.gmra.mxu2 %v175_v0  ;;  %404 = vmatpush.msrb.mxu0 %v241_v1 }
  0x56   : > { %423 = vmatpush.msrb.mxu1 %v258_v2  ;;  %464 = vmatpush.msrb.mxu3 %v289_v3 }
  0x57   : > { %405 = vmatmul.f32.vlgmr.msrb.gmra.mxu0 %v173_v4  ;;  %465 = vmatmul.f32.vlgmr.msrb.gmra.mxu3 %v176_v5 }
  0x58   : > { %424 = vmatpush.msrb.mxu1 %v257_v6 }
  0x59   : > { %425 = vmatmul.f32.vlgmr.msrb.gmra.mxu1 %v174_v7 }
  0xca   : > { %v326_v9 = vpop.f32.mrf.mxu0 }
  0xcb   : > { %v327_v10 = vadd.f32 %v596_v8, %v326_v9 }
  0xcd   : > { %v346_v11 = vpop.f32.mrf.mxu1 }
  0xce   : > { %v347_v12 = vadd.f32 %v346_v11, %v327_v10  ;;  %v366_v13 = vpop.f32.mrf.mxu2 }
  0xd0   : > { %v367_v14 = vadd.f32 %v366_v13, %v347_v12 }
  0xd1   : > { %v386_v15 = vpop.f32.mrf.mxu3 }
  0xd2   : > { %v387_v16 = vadd.f32 %v386_v15, %v367_v14 }
  0xd4   : > { %v406_v17 = vpop.f32.mrf.mxu0 }
  0xd5   : > { %v407_v18 = vadd.f32 %v406_v17, %v387_v16 }
  0xd6   : > { %v426_v19 = vpop.f32.mrf.mxu1 }
  0xd7   : > { %v427_v20 = vadd.f32 %v426_v19, %v407_v18 }
  0xd8   : > { %v446_v21 = vpop.f32.mrf.mxu2 }
  0xd9   : > { %v447_v22 = vadd.f32 %v446_v21, %v427_v20 }
  0xda   : > { %v466_v23 = vpop.f32.mrf.mxu3 }
  0xdb   : > { %v467_v24 = vadd.f32 %v466_v23, %v447_v22 }
  0xdd   : > { %469 = vst [vmem:[%s163_s27] sm:$0xff] %v467_v24 }
  0xde   : > { %624 = shalt.err (!%p621_p3)
}
  0xdf   : > { %557 = dma.vmem_to_hbm [thread:$0]  (%p719_p5), %s484_s28, 128, %s486_s20, %s471_s16  }
  0xe0 PF: > { %p563_p4 = scmp.ge.s32.totalorder %s659_s15, 2  ;;  %s497_s8 = sand.u32 1, %s647_s12  }
  0xe1   : > { %s498_s9 = scalar_lea.sflag [#allocation3], %s497_s8 }
  0xe2   : > { %p560_p7 = pnand %p563_p4, %p723_p6 }
  0xe4   : > { %p561_p8 = pneg %p560_p7 }
  0xe6   : > { %642 = dma.done.wait (%p561_p8), %s498_s9, 128  }
  0xe7   : > { %644 = vsyncadd (%p561_p8), %s498_s9, 4294967168  ;;  %p13_p9 = scmp.ge.s32.totalorder %s706_s18, 6   ;;  %s1174_s12 = smov %s651_s13 }
  0xe8   : > { %s1175_s13 = smov %s655_s14  ;;  %s1176_s14 = smov %s717_s21 }
  0xe9   : > { %s1177_s15 = smov %s706_s18  ;;  %15 = sbr.rel (!%p13_p9) target bundleno = 3 (0x3), region = 67 }
  0xee   :  { %504 = vsyncpa [#allocation3], 1 }
  0xef   :  { %506 = vsyncpa [#allocation3 + $0x1], 1 }

</bundles_post_ra>
